<compile_context>
chip_gen: v7x
topology: tpu7x:2x2x1
jax: 0.10.0
libtpu: 0.0.40
codegen_flags: <defaults>
</compile_context>

<pallas_src>
import math

import jax
import jax.numpy as jnp
from jax.experimental import pallas as pl
from jax.experimental.pallas import tpu as pltpu

_HALF_LOG_2PI = 0.5 * math.log(2.0 * math.pi)


def policy_kernel(x_ref, w1_ref, wheads_ref, bias_ref, eps_ref, out_ref):
    H = w1_ref.shape[1]
    A = wheads_ref.shape[1] // 2

    x = x_ref[...]

    # fc1 + ReLU  (single MXU matmul, bias broadcast over batch)
    h = jnp.dot(x, w1_ref[...], preferred_element_type=jnp.float32) + bias_ref[:, :H]
    h = jnp.maximum(h, 0.0)

    # fused mu/std heads: one (H, 2A) matmul, then slice
    heads = (jnp.dot(h, wheads_ref[...], preferred_element_type=jnp.float32)
             + bias_ref[:, H:])
    mu = heads[:, :A]
    std_pre = heads[:, A:]

    # softplus (numerically stable, matches F.softplus)
    std = jnp.logaddexp(std_pre, 0.0)

    # reparameterized sample: z = mu + std * eps
    eps = eps_ref[...]
    z = mu + std * eps

    # Normal(mu, std).log_prob(z) with (z - mu)/std == eps substituted:
    #   -0.5*eps^2 - log(std) - 0.5*log(2*pi)
    log_prob = -0.5 * eps * eps - jnp.log(std) - _HALF_LOG_2PI

    # tanh squash; reference applies tanh again inside the correction term.
    action = jnp.tanh(z)
    correction = jnp.log(jnp.maximum(1.0 - jnp.tanh(action) ** 2, 1e-06))
    log_prob = log_prob - correction

    logp_sum = jnp.sum(log_prob, axis=-1, keepdims=True)

    # single lane-denser output slab: [action | log_prob | zero pad]
    pad_cols = out_ref.shape[1] - (A + 1)
    pieces = [action, logp_sum]
    if pad_cols > 0:
        pieces.append(jnp.zeros((action.shape[0], pad_cols), jnp.float32))
    out_ref[...] = jnp.concatenate(pieces, axis=-1)


def policy_forward(x, params, eps):
    """x: (B, S) f32, eps: (B, A) f32, params: dict(w1, w_heads, bias)."""
    B, S = x.shape
    H = params["w1"].shape[1]
    A = params["w_heads"].shape[1] // 2

    out_cols = max(8, ((A + 1 + 7) // 8) * 8)   # pad A+1 up to a multiple of 8

    vmem = pl.BlockSpec(memory_space=pltpu.MemorySpace.VMEM)

    flops = 2 * B * (S * H + H * 2 * A)
    transcendentals = B * (6 * A)   # softplus exp/log, 2 tanh, log(std), log corr
    bytes_accessed = (x.size + params["w1"].size + params["w_heads"].size
                      + params["bias"].size + eps.size + B * out_cols) * 4

    out = pl.pallas_call(
        policy_kernel,
        out_shape=jax.ShapeDtypeStruct((B, out_cols), jnp.float32),
        in_specs=[vmem] * 5,
        out_specs=vmem,
        cost_estimate=pl.CostEstimate(
            flops=flops,
            transcendentals=transcendentals,
            bytes_accessed=bytes_accessed,
        ),
    )(x, params["w1"], params["w_heads"], params["bias"], eps)

    action = out[:, :A]
    log_prob = out[:, A:A + 1]
    return action, log_prob


def xavier_uniform(key, fan_in, fan_out):
    bound = math.sqrt(6.0 / (fan_in + fan_out))
    # stored as (fan_in, fan_out) so the kernel can do x @ W directly
    return jax.random.uniform(key, (fan_in, fan_out), jnp.float32, -bound, bound)


def linear_bias(key, fan_in, fan_out):
    # PyTorch nn.Linear default bias init: U(-1/sqrt(fan_in), 1/sqrt(fan_in))
    bound = 1.0 / math.sqrt(fan_in)
    return jax.random.uniform(key, (1, fan_out), jnp.float32, -bound, bound)


def init_params(key, state_dim, hidden_dim, action_dim):
    ks = jax.random.split(key, 6)
    w1 = xavier_uniform(ks[0], state_dim, hidden_dim)
    b1 = linear_bias(ks[1], state_dim, hidden_dim)
    wmu = xavier_uniform(ks[2], hidden_dim, action_dim)
    bmu = linear_bias(ks[3], hidden_dim, action_dim)
    wstd = xavier_uniform(ks[4], hidden_dim, action_dim)
    bstd = linear_bias(ks[5], hidden_dim, action_dim)
    return dict(
        w1=w1,
        w_heads=jnp.concatenate([wmu, wstd], axis=1),        # (H, 2A)
        bias=jnp.concatenate([b1, bmu, bstd], axis=1),        # (1, H+2A)
    )


if __name__ == "__main__":
    state_dim, hidden_dim, action_dim = 12, 32, 4
    batch = 8

    root = jax.random.PRNGKey(0)
    k_params, k_x, k_eps = jax.random.split(root, 3)

    params = init_params(k_params, state_dim, hidden_dim, action_dim)
    x = jax.random.normal(k_x, (batch, state_dim), jnp.float32)
    eps = jax.random.normal(k_eps, (batch, action_dim), jnp.float32)

    action, log_prob = policy_forward(x, params, eps)
    jax.block_until_ready((action, log_prob))

    assert action.shape == (batch, action_dim)
    assert log_prob.shape == (batch, 1)
    assert bool(jnp.all(jnp.isfinite(action))) and bool(jnp.all(jnp.isfinite(log_prob)))
    assert bool(jnp.all(jnp.abs(action) <= 1.0))
    print("KERNEL_OK")
</pallas_src>

<mosaic_0001>
module attributes {stable_mosaic.version = 11 : i64} {
  func.func @policy_kernel(%arg0: memref<8x12xf32, #tpu.memory_space<vmem>>, %arg1: memref<12x32xf32, #tpu.memory_space<vmem>>, %arg2: memref<32x8xf32, #tpu.memory_space<vmem>>, %arg3: memref<1x40xf32, #tpu.memory_space<vmem>>, %arg4: memref<8x4xf32, #tpu.memory_space<vmem>>, %arg5: memref<8x8xf32, #tpu.memory_space<vmem>>) attributes {dimension_semantics = [], scalar_prefetch = 0 : i64, scratch_operands = 0 : i64, tpu.core_type = #tpu.core_type<tc>} {
    %c0 = arith.constant 0 : index
    %c0_0 = arith.constant 0 : index
    %0 = vector.load %arg0[%c0, %c0_0] : memref<8x12xf32, #tpu.memory_space<vmem>>, vector<8x12xf32>
    %c0_1 = arith.constant 0 : index
    %c0_2 = arith.constant 0 : index
    %1 = vector.load %arg1[%c0_1, %c0_2] : memref<12x32xf32, #tpu.memory_space<vmem>>, vector<12x32xf32>
    %cst = arith.constant dense<0.000000e+00> : vector<8x32xf32>
    %2 = tpu.matmul %0, %1, %cst {dimension_numbers = #tpu.dot_dimension_numbers<[1], [0], [0], [1], [0, 0, 1, 1], [], []>} : vector<8x12xf32>, vector<12x32xf32>, vector<8x32xf32> -> vector<8x32xf32>
    %c0_3 = arith.constant 0 : index
    %c0_4 = arith.constant 0 : index
    %3 = vector.load %arg3[%c0_3, %c0_4] : memref<1x40xf32, #tpu.memory_space<vmem>>, vector<1x32xf32>
    %4 = vector.broadcast %3 : vector<1x32xf32> to vector<8x32xf32>
    %5 = arith.addf %2, %4 : vector<8x32xf32>
    %cst_5 = arith.constant 0.000000e+00 : f32
    %6 = vector.broadcast %cst_5 : f32 to vector<8x32xf32>
    %7 = arith.maximumf %5, %6 : vector<8x32xf32>
    %c0_6 = arith.constant 0 : index
    %c0_7 = arith.constant 0 : index
    %8 = vector.load %arg2[%c0_6, %c0_7] : memref<32x8xf32, #tpu.memory_space<vmem>>, vector<32x8xf32>
    %cst_8 = arith.constant dense<0.000000e+00> : vector<8x8xf32>
    %9 = tpu.matmul %7, %8, %cst_8 {dimension_numbers = #tpu.dot_dimension_numbers<[1], [0], [0], [1], [0, 0, 1, 1], [], []>} : vector<8x32xf32>, vector<32x8xf32>, vector<8x8xf32> -> vector<8x8xf32>
    %c0_9 = arith.constant 0 : index
    %c32 = arith.constant 32 : index
    %10 = vector.load %arg3[%c0_9, %c32] : memref<1x40xf32, #tpu.memory_space<vmem>>, vector<1x8xf32>
    %11 = vector.broadcast %10 : vector<1x8xf32> to vector<8x8xf32>
    %12 = arith.addf %9, %11 : vector<8x8xf32>
    %13 = vector.extract_strided_slice %12 {offsets = [0, 0], sizes = [8, 4], strides = [1, 1]} : vector<8x8xf32> to vector<8x4xf32>
    %14 = vector.extract_strided_slice %12 {offsets = [0, 4], sizes = [8, 4], strides = [1, 1]} : vector<8x8xf32> to vector<8x4xf32>
    %cst_10 = arith.constant 0.000000e+00 : f32
    %15 = vector.broadcast %cst_10 : f32 to vector<8x4xf32>
    %16 = arith.maximumf %14, %15 : vector<8x4xf32>
    %17 = vector.broadcast %cst_10 : f32 to vector<8x4xf32>
    %18 = arith.subf %14, %17 : vector<8x4xf32>
    %19 = arith.cmpf one, %18, %18 : vector<8x4xf32>
    %20 = vector.broadcast %cst_10 : f32 to vector<8x4xf32>
    %21 = arith.addf %14, %20 : vector<8x4xf32>
    %22 = math.absf %18 : vector<8x4xf32>
    %cst_11 = arith.constant 0.000000e+00 : f32
    %23 = vector.broadcast %cst_11 : f32 to vector<8x4xf32>
    %24 = arith.subf %23, %22 : vector<8x4xf32>
    %25 = math.exp %24 : vector<8x4xf32>
    %26 = math.log1p %25 : vector<8x4xf32>
    %27 = arith.addf %16, %26 : vector<8x4xf32>
    %28 = arith.select %19, %21, %27 : vector<8x4xi1>, vector<8x4xf32>
    %c0_12 = arith.constant 0 : index
    %c0_13 = arith.constant 0 : index
    %29 = vector.load %arg4[%c0_12, %c0_13] : memref<8x4xf32, #tpu.memory_space<vmem>>, vector<8x4xf32>
    %30 = arith.mulf %28, %29 : vector<8x4xf32>
    %31 = arith.addf %13, %30 : vector<8x4xf32>
    %cst_14 = arith.constant -5.000000e-01 : f32
    %32 = vector.broadcast %cst_14 : f32 to vector<8x4xf32>
    %33 = arith.mulf %32, %29 : vector<8x4xf32>
    %34 = arith.mulf %33, %29 : vector<8x4xf32>
    %35 = math.log %28 : vector<8x4xf32>
    %36 = arith.subf %34, %35 : vector<8x4xf32>
    %cst_15 = arith.constant 0.918938517 : f32
    %37 = vector.broadcast %cst_15 : f32 to vector<8x4xf32>
    %38 = arith.subf %36, %37 : vector<8x4xf32>
    %39 = math.tanh %31 : vector<8x4xf32>
    %40 = math.tanh %39 : vector<8x4xf32>
    %41 = arith.mulf %40, %40 : vector<8x4xf32>
    %cst_16 = arith.constant 1.000000e+00 : f32
    %42 = vector.broadcast %cst_16 : f32 to vector<8x4xf32>
    %43 = arith.subf %42, %41 : vector<8x4xf32>
    %cst_17 = arith.constant 9.99999997E-7 : f32
    %44 = vector.broadcast %cst_17 : f32 to vector<8x4xf32>
    %45 = arith.maximumf %43, %44 : vector<8x4xf32>
    %46 = math.log %45 : vector<8x4xf32>
    %47 = arith.subf %38, %46 : vector<8x4xf32>
    %cst_18 = arith.constant dense<0.000000e+00> : vector<8xf32>
    %48 = vector.multi_reduction <add>, %47, %cst_18 [1] : vector<8x4xf32> to vector<8xf32>
    %49 = vector.shape_cast %48 : vector<8xf32> to vector<8x1xf32>
    %cst_19 = arith.constant 0.000000e+00 : f32
    %50 = vector.broadcast %cst_19 : f32 to vector<8x3xf32>
    %51 = tpu.concatenate %39, %49, %50 in 1 : vector<8x4xf32>, vector<8x1xf32>, vector<8x3xf32> -> vector<8x8xf32>
    %c0_20 = arith.constant 0 : index
    %c0_21 = arith.constant 0 : index
    %52 = vector.load %arg5[%c0_20, %c0_21] : memref<8x8xf32, #tpu.memory_space<vmem>>, vector<8x8xf32>
    tpu.vector_store %arg5[%c0_20, %c0_21], %51 {strides = array<i32>} : memref<8x8xf32, #tpu.memory_space<vmem>>, vector<8x8xf32>,
    return
  }
}

</mosaic_0001>

<bundles_post_ra>
// kernel: tpu_custom_call.1
= control target key start
LH: loop header
LB: loop body
LE: loop exit
PB: predicated region body
PF: predicated region fallthrough
CT: control target
= control target key end

     0   :  { %vm35_vm0 = vcmask 1043456   ;;  %v346_v2 = vmov 0.0|0.0   ;;  %vm347_vm1 = vmmov 1   ;;  %vm348_vm3 = vmmov 0   ;;  %s423_s0 = inlined_call_operand.vmem [shape: f32[8,12], index: 0, kind: input, shape index: {}]   ;;  %s424_s1 = inlined_call_operand.vmem [shape: f32[12,32], index: 1, kind: input, shape index: {}]   ;;  %s425_s2 = inlined_call_operand.vmem [shape: f32[32,8], index: 2, kind: input, shape index: {}]   ;;  %s426_s3 = inlined_call_operand.vmem [shape: f32[1,40], index: 3, kind: input, shape index: {}]   ;;  %s427_s4 = inlined_call_operand.vmem [shape: f32[8,4], index: 4, kind: input, shape index: {}]   ;;  %s428_s5 = inlined_call_operand.hbm [shape: f32[8,8], index: 5, kind: output, shape index: {}]  }
   0x1   :  { %v22_v0 = vld [vmem:[%s424_s1] sm:$0xff]  ;;  %v23_v1 = vld [vmem:[%s424_s1 + $0x8] sm:$0xf]  ;;  %292 = vmatprep.subr.bf16.mxu0 %v346_v2  ;;  %vm294_vm2 = vmpackc.low %vm35_vm0, %vm347_vm1  ;;  %296 = vmatprep.subr.bf16.mxu1 %v346_v2  ;;  %v349_v5 = vmov 0.0  }
   0x2   :  { %v293_v3 = vpack.c.bf16 %v23_v1, %v22_v0  ;;  %v110_v4 = vld [vmem:[%s425_s2] sm:$0xff]  ;;  %278 = vmatprep.mubr.msk.f32.mxu0 %vm348_vm3, %v349_v5  ;;  %v111_v6 = vld [vmem:[%s425_s2 + $0x8] sm:$0xff]  ;;  %289 = vmatprep.mubr.msk.f32.mxu1 %vm348_vm3, %v349_v5 }
   0x3   :  { %10 = vsyncpa [#allocation3], 0  ;;  %v21_v7 = vld [vmem:[%s423_s0] sm:$0xff]  ;;  %vm31_vm4 = vcmask 97280   ;;  %v297_v8 = vpack.c.bf16 %v111_v6, %v110_v4  ;;  %v112_v9 = vld [vmem:[%s425_s2 + $0x10] sm:$0xff]  ;;  %s350_s0 = smov 96  }
   0x4   :  { %295 = vmatpush3.bf16.msk.msra.mxu0 %vm294_vm2, %v293_v3  ;;  %v113_v10 = vld [vmem:[%s425_s2 + $0x18] sm:$0xff]  ;;  %v261_v12 = vld [vmem:[%s426_s3] ss:$0 sm:$0xff]  ;;  %s351_s10 = smov 4   ;;  %vm117_vm5 = vcmask 261120   ;;  %s352_s2 = smov 124  }
   0x5   :  { %298 = vmatpush3.bf16.msra.mxu1 %v297_v8  ;;  %v300_v11 = vpack.c.bf16 %v113_v10, %v112_v9  ;;  %114 = vrot.lane.b32.xlu0 %v261_v12, %s350_s0  ;;  %v209_v13 = vld [vmem:[%s427_s4] sm:$0xff]  ;;  %vm238_vm8 = vcmask 31744   ;;  %s353_s3 = smov [#allocation2]   ;;  %vm243_vm9 = vcmask 39936   ;;  %vm245_vm10 = vcmask 64512  }
   0x6   :  { %299 = vmatprep.subr.bf16.mxu1 %v346_v2  ;;  %v220_v48 = vmul.f32 -0.5, %v209_v13  ;;  %s253_s4 = sshll.u32 %s353_s3, 4  ;;  %s254_s4 = int_to_ptr.vmem [resolvable:$true] %s253_s4 }
   0x7   :  { %279 = vmatmul.mubr.msk.f32.vlgmr.msra.gmra.mrb[0].mxu0 %vm31_vm4, %v21_v7  ;;  %s322_s11 = scalar_lea.vmem %s254_s4, 128  ;;  %p327_p1 = scmp.lt.s32.totalorder %s254_s4, %s254_s4 }
   0x8   :  { %v221_v49 = vmul.f32 %v220_v48, %v209_v13  ;;  %p323_p0 = scmp.ne.s32.totalorder %s254_s4, %s322_s11  ;;  %p328_p2 = scmp.lt.s32.totalorder %s322_s11, %s322_s11 }
   0x9   :  { %301 = vmatpush3.bf16.msra.mxu1 %v300_v11  ;;  %211 = vrot.lane.b32.xlu0 %v209_v13, %s351_s10 }
   0xa   :  { %p329_p3 = por %p328_p2, %p327_p1 }
   0xc   :  { %p330_p4 = pnand %p329_p3, %p323_p0 }
  0x77   :  { %v115_v18 = vpop.permute.xlu0 %114 }
  0x7b   :  { %v212_v35 = vpop.permute.xlu0 %211 }
  0xda   :  { %v105_v14 = vpop.f32.mrb[0].mxu0 }
  0xdb   :  { %v106_v15 = vadd.f32 %v261_v12, %v105_v14  ;;  %v280_v16 = vpop.f32.mrb[1].mxu0 }
  0xdd   :  { %v109_v17 = vmax.f32 %v106_v15, 0.0 }
  0xdf   :  { %290 = vmatmul.mubr.msk.f32.vlgmr.msra.gmra.mrb[0].mxu1 %vm117_vm5, %v109_v17 }
 0x1b2   :  { %v187_v19 = vpop.f32.mrb[0].mxu1 }
 0x1b3   :  { %v188_v20 = vadd.f32 %v187_v19, %v115_v18  ;;  %v291_v21 = vpop.f32.mrb[1].mxu1 }
 0x1b5   :  { %v194_v22 = vand.u32 2147483647, %v188_v20  ;;  %v191_v33 = vmax.f32 %v188_v20, 0.0  ;;  %vm192_vm7 = vcmp.ne.f32.partialorder %v188_v20, %v188_v20 }
 0x1b7   :  { %v195_v23 = vsub.f32 0.0, %v194_v22 }
 0x1b9   :  { %v196_v24 = vmul.f32 1.442695, %v195_v23 }
 0x1bb   :  { %310 = vpow2.f32 %v196_v24 }
 0x1c5   :  { %v311_v25 = vpop.eup %310 }
 0x1c6   :  { %v198_v26 = vadd.f32 1.0, %v311_v25  ;;  %v201_v27 = vmul.f32 -0.5, %v311_v25  ;;  %v204_v29 = vand.u32 2147483647, %v311_v25 }
 0x1c8   :  { %312 = vlog2.f32 %v198_v26  ;;  %v202_v28 = vadd.f32 1.0, %v201_v27  ;;  %vm205_vm6 = vcmp.lt.f32.partialorder %v204_v29, 0.0004427343 }
 0x1ca   :  { %v203_v32 = vmul.f32 %v311_v25, %v202_v28 }
 0x1d2   :  { %v313_v30 = vpop.eup %312 }
 0x1d3   :  { %v200_v31 = vmul.f32 0.6931472, %v313_v30 }
 0x1d5   :  { %v206_v34 = vsel %vm205_vm6, %v203_v32, %v200_v31 }
 0x1d6   :  { %v207_v36 = vadd.f32 %v206_v34, %v191_v33 }
 0x1d8   :  { %v208_v37 = vsel %vm192_vm7, %v188_v20, %v207_v36 }
 0x1d9   :  { %v214_v38 = vmul.f32 %v212_v35, %v208_v37  ;;  %314 = vlog2.f32 %v208_v37 }
 0x1db   :  { %216 = vrot.lane.b32.xlu1 %v214_v38, %s352_s2 }
 0x1e3   :  { %v315_v39 = vpop.eup %314 }
 0x1e4   :  { %v223_v40 = vmul.f32 0.6931472, %v315_v39 }
 0x1e6   :  { %225 = vrot.lane.b32.xlu1 %v223_v40, %s352_s2 }
 0x24d   :  { %v217_v41 = vpop.permute.xlu1 %216 }
 0x24e   :  { %v219_v42 = vadd.f32 %v217_v41, %v188_v20 }
 0x250   :  { %316 = vtanh.f32 %v219_v42 }
 0x258   :  { %v226_v50 = vpop.permute.xlu1 %225 }
 0x259   :  { %v228_v51 = vsub.f32 %v221_v49, %v226_v50 }
 0x25a   :  { %v317_v43 = vpop.eup %316 }
 0x25b   :  { %318 = vtanh.f32 %v317_v43  ;;  %v265_v53 = vadd.f32 -0.9189385, %v228_v51 }
 0x265   :  { %v319_v44 = vpop.eup %318 }
 0x266   :  { %v232_v45 = vmul.f32 %v319_v44, %v319_v44 }
 0x268   :  { %v233_v46 = vsub.f32 1.0, %v232_v45 }
 0x26a   :  { %v234_v47 = vmax.f32 %v233_v46, 1e-06 }
 0x26c   :  { %320 = vlog2.f32 %v234_v47 }
 0x276   :  { %v321_v52 = vpop.eup %320 }
 0x277   :  { %v236_v54 = vmul.f32 0.6931472, %v321_v52 }
 0x279   :  { %v237_v55 = vsub.f32 %v265_v53, %v236_v54 }
 0x27b   :  { %v239_v56 = vsel %vm238_vm8, %v237_v55, 0.0 }
 0x27c   :  { %240 = vadd.xlane.f32.xlu0 %v239_v56 }
 0x309   :  { %v241_v57 = vpop.xlane.xlu0 %240 }
 0x30a   :  { %v242_v58 = vsel %vm238_vm8, %v317_v43, %v241_v57 }
 0x30b   :  { %v244_v59 = vsel %vm243_vm9, %v242_v58, 0.0 }
 0x30c   :  { %246 = vst.msk [vmem:[#allocation2] sm:$0xff] %vm245_vm10, %v244_v59 }
 0x30d   :  { %333 = shalt.err (!%p330_p4)
}
 0x30e   :  { %s334_s14 = scalar_lea.hbm %s428_s5, 128 }
 0x30f   :  { %p335_p5 = scmp.ne.s32.totalorder %s428_s5, %s334_s14  ;;  %p338_p6 = scmp.lt.u32.totalorder %s334_s14, %s428_s5 }
 0x311   :  { %p340_p7 = pnand %p338_p6, %p335_p5 }
 0x313   :  { %343 = shalt.err (!%p340_p7)
}
 0x314   :  { %256 = dma.vmem_to_hbm [thread:$0]  %s254_s4, 128, %s428_s5, [#allocation3]  }
 0x315   :  { %344 = dma.done.wait [#allocation3], 128  }
 0x316   :  { %345 = vsyncadd [#allocation3], 4294967168 }
 0x317   :  { %260 = vsyncpa [#allocation3], 1 }

</bundles_post_ra>
